<compile_context>
chip_gen: v6e
topology: v6e:2x2x1
jax: 0.10.0
libtpu: 0.0.40
codegen_flags: <defaults>
</compile_context>

<pallas_src>
import functools

import jax
import jax.numpy as jnp
from jax.experimental import pallas as pl
from jax.experimental.pallas import tpu as pltpu

EPS = 1e-5
F_IN = 96          # input feature dim
F_PAD = 128        # hidden feature dims padded to 128 lanes
F_OUT = 16         # true output feature dim
TM_DEFAULT = 2048  # batch tile for the tiled path (~1-2 MiB per tile)


# ----------------------------- kernel helpers --------------------------------

def _fold_bn(s, ss, gamma, beta, inv_n):
    """Per-feature (1, F_PAD) scale/shift from global batch sum / sum-of-squares."""
    mean = s * inv_n
    var = ss * inv_n - mean * mean                 # biased variance (PyTorch BN)
    scale = gamma * jax.lax.rsqrt(var + EPS)       # gamma folded in
    shift = beta - mean * scale                    # beta folded in
    return scale, shift


def _bn_relu(y, stats, gb, inv_n):
    scale, shift = _fold_bn(stats[0:1, :], stats[1:2, :],
                            gb[0:1, :], gb[1:2, :], inv_n)
    return jnp.maximum(y * scale + shift, 0.0)


def _mm(a, w_bf16):
    """bf16 MXU operands, f32 accumulation."""
    return jnp.dot(a.astype(jnp.bfloat16), w_bf16,
                   preferred_element_type=jnp.float32)


def _accum_stats(stats_ref, y):
    """Accumulate per-feature sum / sumsq as one full (2,128) RMW per grid step."""
    @pl.when(pl.program_id(0) == 0)
    def _():
        stats_ref[...] = jnp.zeros_like(stats_ref)

    s = jnp.sum(y, axis=0, keepdims=True)
    ss = jnp.sum(y * y, axis=0, keepdims=True)
    stats_ref[...] += jnp.concatenate([s, ss], axis=0)


# --------------------------- fused (small-batch) path ------------------------

def fused_kernel(x_ref, w1_ref, gb1_ref, w2_ref, gb2_ref, w3_ref, gb3_ref,
                 o_ref, *, inv_n):
    def bn_relu_local(h, gb):
        s = jnp.sum(h, axis=0, keepdims=True)
        ss = jnp.sum(h * h, axis=0, keepdims=True)
        scale, shift = _fold_bn(s, ss, gb[0:1, :], gb[1:2, :], inv_n)
        return jnp.maximum(h * scale + shift, 0.0)

    h = _mm(x_ref[...], w1_ref[...])               # Linear(96 -> 128)
    h = bn_relu_local(h, gb1_ref[...])
    h = _mm(h, w2_ref[...])                        # Linear(128 -> 64), padded
    h = bn_relu_local(h, gb2_ref[...])
    h = _mm(h, w3_ref[...])                        # Linear(64 -> 16), padded
    h = bn_relu_local(h, gb3_ref[...])
    o_ref[...] = h[:, :F_OUT]                      # compact (N, 16) store


@functools.lru_cache(maxsize=1)
def _vmem_capacity_bytes():
    try:
        return int(pltpu.get_tpu_info().vmem_capacity_bytes)
    except Exception:
        return 64 << 20   # conservative fallback (v7x per-core physical VMEM)


def _fused_row_limit():
    # ~4 KiB/row conservative resident estimate; keep under ~half of VMEM.
    return max(TM_DEFAULT, (_vmem_capacity_bytes() // 2) // 4096)


def _fused_call(x, kp):
    n = x.shape[0]
    vmem = pl.BlockSpec(memory_space=pltpu.MemorySpace.VMEM)
    vmem_limit = min(int(_vmem_capacity_bytes() * 3 // 4), 128 << 20)
    return pl.pallas_call(
        functools.partial(fused_kernel, inv_n=1.0 / n),
        out_shape=jax.ShapeDtypeStruct((n, F_OUT), jnp.float32),
        in_specs=[vmem] * 7,
        out_specs=vmem,
        compiler_params=pltpu.CompilerParams(vmem_limit_bytes=vmem_limit),
    )(x, kp["w1"], kp["gb1"], kp["w2"], kp["gb2"], kp["w3"], kp["gb3"])


# --------------------------- tiled (large-batch) path ------------------------

def stats1_kernel(x_ref, w1_ref, xb_ref, s1_ref):
    """Cast x->bf16 (stored for reuse), y1 = x@W1, accumulate layer-1 stats."""
    xb = x_ref[...].astype(jnp.bfloat16)
    xb_ref[...] = xb
    y1 = jnp.dot(xb, w1_ref[...], preferred_element_type=jnp.float32)
    _accum_stats(s1_ref, y1)


def stats2_kernel(xb_ref, w1_ref, s1_ref, gb1_ref, w2_ref, s2_ref, *, inv_n):
    """Recompute layer 1 from bf16 x, BN1+ReLU (global stats), layer-2 matmul, stats."""
    y1 = _mm(xb_ref[...], w1_ref[...])
    a1 = _bn_relu(y1, s1_ref[...], gb1_ref[...], inv_n)
    y2 = _mm(a1, w2_ref[...])
    _accum_stats(s2_ref, y2)


def stats3_kernel(xb_ref, w1_ref, s1_ref, gb1_ref, w2_ref, s2_ref, gb2_ref,
                  w3_ref, s3_ref, *, inv_n):
    """Recompute layers 1-2 from bf16 x, layer-3 matmul, accumulate layer-3 stats."""
    y1 = _mm(xb_ref[...], w1_ref[...])
    a1 = _bn_relu(y1, s1_ref[...], gb1_ref[...], inv_n)
    y2 = _mm(a1, w2_ref[...])
    a2 = _bn_relu(y2, s2_ref[...], gb2_ref[...], inv_n)
    y3 = _mm(a2, w3_ref[...])
    _accum_stats(s3_ref, y3)


def final_kernel(xb_ref, w1_ref, s1_ref, gb1_ref, w2_ref, s2_ref, gb2_ref,
                 w3_ref, s3_ref, gb3_ref, o_ref, *, inv_n):
    """Full recompute + BN3+ReLU; compact (tm, 16) output."""
    y1 = _mm(xb_ref[...], w1_ref[...])
    a1 = _bn_relu(y1, s1_ref[...], gb1_ref[...], inv_n)
    y2 = _mm(a1, w2_ref[...])
    a2 = _bn_relu(y2, s2_ref[...], gb2_ref[...], inv_n)
    y3 = _mm(a2, w3_ref[...])
    a3 = _bn_relu(y3, s3_ref[...], gb3_ref[...], inv_n)
    o_ref[...] = a3[:, :F_OUT]


def _tiled_call(x, kp, tm):
    n = x.shape[0]
    grid = (n // tm,)
    inv_n = 1.0 / n

    x_spec = pl.BlockSpec((tm, F_IN), lambda i: (i, 0))

    def const_spec(shape):
        return pl.BlockSpec(shape, lambda i: (0, 0))

    w96_spec = const_spec((F_IN, F_PAD))
    w_spec = const_spec((F_PAD, F_PAD))
    gb_spec = const_spec((2, F_PAD))
    stats_spec = const_spec((2, F_PAD))
    out_spec = pl.BlockSpec((tm, F_OUT), lambda i: (i, 0))

    stats_shape = jax.ShapeDtypeStruct((2, F_PAD), jnp.float32)
    xb_shape = jax.ShapeDtypeStruct((n, F_IN), jnp.bfloat16)

    # Stats accumulators ride the batch axis -> "arbitrary"; final pass is
    # embarrassingly parallel over batch tiles.
    acc_cp = pltpu.CompilerParams(dimension_semantics=("arbitrary",))
    par_cp = pltpu.CompilerParams(dimension_semantics=("parallel",))

    # Pass 1: bf16 copy of x + layer-1 stats (no activation round trip).
    xb, s1 = pl.pallas_call(
        stats1_kernel,
        grid=grid,
        in_specs=[x_spec, w96_spec],
        out_specs=(x_spec, stats_spec),
        out_shape=(xb_shape, stats_shape),
        compiler_params=acc_cp,
    )(x, kp["w1"])

    # Pass 2: layer-2 stats (recompute layer 1 from xb).
    s2 = pl.pallas_call(
        functools.partial(stats2_kernel, inv_n=inv_n),
        grid=grid,
        in_specs=[x_spec, w96_spec, stats_spec, gb_spec, w_spec],
        out_specs=stats_spec,
        out_shape=stats_shape,
        compiler_params=acc_cp,
    )(xb, kp["w1"], s1, kp["gb1"], kp["w2"])

    # Pass 3: layer-3 stats (recompute layers 1-2 from xb).
    s3 = pl.pallas_call(
        functools.partial(stats3_kernel, inv_n=inv_n),
        grid=grid,
        in_specs=[x_spec, w96_spec, stats_spec, gb_spec, w_spec,
                  stats_spec, gb_spec, w_spec],
        out_specs=stats_spec,
        out_shape=stats_shape,
        compiler_params=acc_cp,
    )(xb, kp["w1"], s1, kp["gb1"], kp["w2"], s2, kp["gb2"], kp["w3"])

    # Pass 4: full recompute + BN3+ReLU, compact (N, 16) output.
    return pl.pallas_call(
        functools.partial(final_kernel, inv_n=inv_n),
        grid=grid,
        in_specs=[x_spec, w96_spec, stats_spec, gb_spec, w_spec,
                  stats_spec, gb_spec, w_spec, stats_spec, gb_spec],
        out_specs=out_spec,
        out_shape=jax.ShapeDtypeStruct((n, F_OUT), jnp.float32),
        compiler_params=par_cp,
    )(xb, kp["w1"], s1, kp["gb1"], kp["w2"], s2, kp["gb2"], kp["w3"], s3,
      kp["gb3"])


# --------------------------------- wrapper ------------------------------------

def face_encoder(x, kparams, *, block_rows=None):
    """x: (N, 96) float32; kparams: packed params (see pack_params). Returns (N, 16)."""
    n = x.shape[0]
    assert x.shape[1] == F_IN
    if block_rows is None:
        if n <= _fused_row_limit():
            return _fused_call(x, kparams)
        block_rows = TM_DEFAULT
    if block_rows >= n:
        return _fused_call(x, kparams)
    # TODO(synk): ragged batches (n % block_rows != 0) need a masked last tile.
    assert n % block_rows == 0 and block_rows % 16 == 0, (n, block_rows)
    return _tiled_call(x, kparams, block_rows)


# ----------------------------- params (PyTorch init) --------------------------

def _kaiming_uniform(key, fan_in, fan_out):
    # kaiming_uniform_(mode='fan_in', nonlinearity='relu'): bound = sqrt(2)*sqrt(3/fan_in)
    bound = jnp.sqrt(2.0) * jnp.sqrt(3.0 / fan_in)
    # stored as (in, out) == PyTorch (out, in) transposed
    return jax.random.uniform(key, (fan_in, fan_out), jnp.float32,
                              minval=-bound, maxval=bound)


def _linear_bias(key, fan_in, fan_out):
    # nn.Linear default bias init (kept only for the f32 reference; the kernel
    # drops it — exactly cancelled by training-mode BatchNorm).
    bound = 1.0 / jnp.sqrt(float(fan_in))
    return jax.random.uniform(key, (1, fan_out), jnp.float32,
                              minval=-bound, maxval=bound)


def init_params(key):
    ks = jax.random.split(key, 6)
    dims = [(96, 128), (128, 64), (64, 16)]
    params = {}
    for i, (fi, fo) in enumerate(dims, start=1):
        params[f"w{i}"] = _kaiming_uniform(ks[2 * (i - 1)], fi, fo)
        params[f"b{i}"] = _linear_bias(ks[2 * (i - 1) + 1], fi, fo)
        params[f"g{i}"] = jnp.ones((1, fo), jnp.float32)    # BN weight = 1
        params[f"be{i}"] = jnp.zeros((1, fo), jnp.float32)  # BN bias = 0
    return params


def pack_params(params):
    """Zero-pad weights to 128 lanes (bf16), pack gamma/beta into (2,128) rows."""
    def pad_w(w, rows, cols):
        wp = jnp.zeros((rows, cols), jnp.float32)
        wp = wp.at[: w.shape[0], : w.shape[1]].set(w)
        return wp.astype(jnp.bfloat16)

    def pack_gb(g, b):
        # gamma padded with ZEROS: dead lanes get scale=0 -> stay exactly 0.
        gb = jnp.zeros((2, F_PAD), jnp.float32)
        gb = gb.at[0, : g.shape[-1]].set(g.reshape(-1))
        gb = gb.at[1, : b.shape[-1]].set(b.reshape(-1))
        return gb

    return {
        "w1": pad_w(params["w1"], F_IN, F_PAD),
        "w2": pad_w(params["w2"], F_PAD, F_PAD),
        "w3": pad_w(params["w3"], F_PAD, F_PAD),
        "gb1": pack_gb(params["g1"], params["be1"]),
        "gb2": pack_gb(params["g2"], params["be2"]),
        "gb3": pack_gb(params["g3"], params["be3"]),
    }


# -------------------------------- references ----------------------------------

def face_encoder_ref_f32(x, params):
    """Exact PyTorch-module math: f32 matmuls + Linear bias + training-mode BN."""
    h = x
    for i in (1, 2, 3):
        h = h @ params[f"w{i}"] + params[f"b{i}"]
        mean = jnp.mean(h, axis=0, keepdims=True)
        var = jnp.mean((h - mean) ** 2, axis=0, keepdims=True)
        h = (h - mean) / jnp.sqrt(var + EPS)
        h = h * params[f"g{i}"] + params[f"be{i}"]
        h = jnp.maximum(h, 0.0)
    return h


def face_encoder_ref_bf16mm(x, params):
    """Same math with bias dropped (exact cancellation) and bf16 matmul operands
    — matches the kernel's arithmetic for a tight tolerance check."""
    h = x
    for i in (1, 2, 3):
        w = params[f"w{i}"].astype(jnp.bfloat16)
        h = jnp.dot(h.astype(jnp.bfloat16), w, preferred_element_type=jnp.float32)
        mean = jnp.mean(h, axis=0, keepdims=True)
        var = jnp.mean((h - mean) ** 2, axis=0, keepdims=True)
        h = (h - mean) * jax.lax.rsqrt(var + EPS)
        h = h * params[f"g{i}"] + params[f"be{i}"]
        h = jnp.maximum(h, 0.0)
    return h


# ----------------------------------- main --------------------------------------

if __name__ == "__main__":
    key = jax.random.PRNGKey(0)
    pkey, xkey1, xkey2 = jax.random.split(key, 3)
    params = init_params(pkey)
    kparams = pack_params(params)

    # Path 1: fused single-kernel path (whole batch resident in VMEM), batch = 8.
    x_small = jax.random.normal(xkey1, (8, F_IN), jnp.float32)
    out_small = jax.block_until_ready(face_encoder(x_small, kparams))
    assert out_small.shape == (8, F_OUT), out_small.shape
    ref_t = face_encoder_ref_bf16mm(x_small, params)
    ref_e = face_encoder_ref_f32(x_small, params)
    assert jnp.allclose(out_small, ref_t, atol=1e-2, rtol=1e-2), \
        float(jnp.max(jnp.abs(out_small - ref_t)))
    # loose: the only deviation from the exact f32 module math is bf16 MXU rounding
    assert jnp.allclose(out_small, ref_e, atol=0.15, rtol=0.15), \
        float(jnp.max(jnp.abs(out_small - ref_e)))

    # Path 2: batch-tiled recompute pipeline (global BN stats accumulated across
    # tiles), batch = 64 split into 4 tiles of 16 rows.
    x_big = jax.random.normal(xkey2, (64, F_IN), jnp.float32)
    out_big = jax.block_until_ready(face_encoder(x_big, kparams, block_rows=16))
    assert out_big.shape == (64, F_OUT), out_big.shape
    ref_tb = face_encoder_ref_bf16mm(x_big, params)
    ref_eb = face_encoder_ref_f32(x_big, params)
    assert jnp.allclose(out_big, ref_tb, atol=1e-2, rtol=1e-2), \
        float(jnp.max(jnp.abs(out_big - ref_tb)))
    assert jnp.allclose(out_big, ref_eb, atol=0.15, rtol=0.15), \
        float(jnp.max(jnp.abs(out_big - ref_eb)))

    print("KERNEL_OK")
</pallas_src>

<mosaic_0001>
module attributes {stable_mosaic.version = 11 : i64} {
  func.func @fused_kernel(%arg0: memref<8x96xf32, #tpu.memory_space<vmem>>, %arg1: memref<96x128xbf16, #tpu.memory_space<vmem>>, %arg2: memref<2x128xf32, #tpu.memory_space<vmem>>, %arg3: memref<128x128xbf16, #tpu.memory_space<vmem>>, %arg4: memref<2x128xf32, #tpu.memory_space<vmem>>, %arg5: memref<128x128xbf16, #tpu.memory_space<vmem>>, %arg6: memref<2x128xf32, #tpu.memory_space<vmem>>, %arg7: memref<8x16xf32, #tpu.memory_space<vmem>>) attributes {dimension_semantics = [], scalar_prefetch = 0 : i64, scratch_operands = 0 : i64, tpu.core_type = #tpu.core_type<tc>} {
    %c0 = arith.constant 0 : index
    %c0_0 = arith.constant 0 : index
    %0 = vector.load %arg0[%c0, %c0_0] : memref<8x96xf32, #tpu.memory_space<vmem>>, vector<8x96xf32>
    %c0_1 = arith.constant 0 : index
    %c0_2 = arith.constant 0 : index
    %1 = vector.load %arg1[%c0_1, %c0_2] : memref<96x128xbf16, #tpu.memory_space<vmem>>, vector<96x128xbf16>
    %2 = arith.truncf %0 : vector<8x96xf32> to vector<8x96xbf16>
    %cst = arith.constant dense<0.000000e+00> : vector<8x128xf32>
    %3 = tpu.matmul %2, %1, %cst {dimension_numbers = #tpu.dot_dimension_numbers<[1], [0], [0], [1], [0, 0, 1, 1], [], []>} : vector<8x96xbf16>, vector<96x128xbf16>, vector<8x128xf32> -> vector<8x128xf32>
    %c0_3 = arith.constant 0 : index
    %c0_4 = arith.constant 0 : index
    %4 = vector.load %arg2[%c0_3, %c0_4] : memref<2x128xf32, #tpu.memory_space<vmem>>, vector<2x128xf32>
    %cst_5 = arith.constant dense<0.000000e+00> : vector<128xf32>
    %5 = vector.multi_reduction <add>, %3, %cst_5 [0] : vector<8x128xf32> to vector<128xf32>
    %6 = vector.shape_cast %5 : vector<128xf32> to vector<1x128xf32>
    %7 = arith.mulf %3, %3 : vector<8x128xf32>
    %cst_6 = arith.constant dense<0.000000e+00> : vector<128xf32>
    %8 = vector.multi_reduction <add>, %7, %cst_6 [0] : vector<8x128xf32> to vector<128xf32>
    %9 = vector.shape_cast %8 : vector<128xf32> to vector<1x128xf32>
    %10 = vector.extract_strided_slice %4 {offsets = [0, 0], sizes = [1, 128], strides = [1, 1]} : vector<2x128xf32> to vector<1x128xf32>
    %11 = vector.extract_strided_slice %4 {offsets = [1, 0], sizes = [1, 128], strides = [1, 1]} : vector<2x128xf32> to vector<1x128xf32>
    %cst_7 = arith.constant 1.250000e-01 : f32
    %12 = vector.broadcast %cst_7 : f32 to vector<1x128xf32>
    %13 = arith.mulf %6, %12 : vector<1x128xf32>
    %cst_8 = arith.constant 1.250000e-01 : f32
    %14 = vector.broadcast %cst_8 : f32 to vector<1x128xf32>
    %15 = arith.mulf %9, %14 : vector<1x128xf32>
    %16 = arith.mulf %13, %13 : vector<1x128xf32>
    %17 = arith.subf %15, %16 : vector<1x128xf32>
    %cst_9 = arith.constant 9.99999974E-6 : f32
    %18 = vector.broadcast %cst_9 : f32 to vector<1x128xf32>
    %19 = arith.addf %17, %18 : vector<1x128xf32>
    %20 = math.rsqrt %19 : vector<1x128xf32>
    %21 = arith.mulf %10, %20 : vector<1x128xf32>
    %22 = arith.mulf %13, %21 : vector<1x128xf32>
    %23 = arith.subf %11, %22 : vector<1x128xf32>
    %24 = vector.broadcast %21 : vector<1x128xf32> to vector<8x128xf32>
    %25 = arith.mulf %3, %24 : vector<8x128xf32>
    %26 = vector.broadcast %23 : vector<1x128xf32> to vector<8x128xf32>
    %27 = arith.addf %25, %26 : vector<8x128xf32>
    %cst_10 = arith.constant 0.000000e+00 : f32
    %28 = vector.broadcast %cst_10 : f32 to vector<8x128xf32>
    %29 = arith.maximumf %27, %28 : vector<8x128xf32>
    %c0_11 = arith.constant 0 : index
    %c0_12 = arith.constant 0 : index
    %30 = vector.load %arg3[%c0_11, %c0_12] : memref<128x128xbf16, #tpu.memory_space<vmem>>, vector<128x128xbf16>
    %31 = arith.truncf %29 : vector<8x128xf32> to vector<8x128xbf16>
    %cst_13 = arith.constant dense<0.000000e+00> : vector<8x128xf32>
    %32 = tpu.matmul %31, %30, %cst_13 {dimension_numbers = #tpu.dot_dimension_numbers<[1], [0], [0], [1], [0, 0, 1, 1], [], []>} : vector<8x128xbf16>, vector<128x128xbf16>, vector<8x128xf32> -> vector<8x128xf32>
    %c0_14 = arith.constant 0 : index
    %c0_15 = arith.constant 0 : index
    %33 = vector.load %arg4[%c0_14, %c0_15] : memref<2x128xf32, #tpu.memory_space<vmem>>, vector<2x128xf32>
    %cst_16 = arith.constant dense<0.000000e+00> : vector<128xf32>
    %34 = vector.multi_reduction <add>, %32, %cst_16 [0] : vector<8x128xf32> to vector<128xf32>
    %35 = vector.shape_cast %34 : vector<128xf32> to vector<1x128xf32>
    %36 = arith.mulf %32, %32 : vector<8x128xf32>
    %cst_17 = arith.constant dense<0.000000e+00> : vector<128xf32>
    %37 = vector.multi_reduction <add>, %36, %cst_17 [0] : vector<8x128xf32> to vector<128xf32>
    %38 = vector.shape_cast %37 : vector<128xf32> to vector<1x128xf32>
    %39 = vector.extract_strided_slice %33 {offsets = [0, 0], sizes = [1, 128], strides = [1, 1]} : vector<2x128xf32> to vector<1x128xf32>
    %40 = vector.extract_strided_slice %33 {offsets = [1, 0], sizes = [1, 128], strides = [1, 1]} : vector<2x128xf32> to vector<1x128xf32>
    %cst_18 = arith.constant 1.250000e-01 : f32
    %41 = vector.broadcast %cst_18 : f32 to vector<1x128xf32>
    %42 = arith.mulf %35, %41 : vector<1x128xf32>
    %cst_19 = arith.constant 1.250000e-01 : f32
    %43 = vector.broadcast %cst_19 : f32 to vector<1x128xf32>
    %44 = arith.mulf %38, %43 : vector<1x128xf32>
    %45 = arith.mulf %42, %42 : vector<1x128xf32>
    %46 = arith.subf %44, %45 : vector<1x128xf32>
    %cst_20 = arith.constant 9.99999974E-6 : f32
    %47 = vector.broadcast %cst_20 : f32 to vector<1x128xf32>
    %48 = arith.addf %46, %47 : vector<1x128xf32>
    %49 = math.rsqrt %48 : vector<1x128xf32>
    %50 = arith.mulf %39, %49 : vector<1x128xf32>
    %51 = arith.mulf %42, %50 : vector<1x128xf32>
    %52 = arith.subf %40, %51 : vector<1x128xf32>
    %53 = vector.broadcast %50 : vector<1x128xf32> to vector<8x128xf32>
    %54 = arith.mulf %32, %53 : vector<8x128xf32>
    %55 = vector.broadcast %52 : vector<1x128xf32> to vector<8x128xf32>
    %56 = arith.addf %54, %55 : vector<8x128xf32>
    %cst_21 = arith.constant 0.000000e+00 : f32
    %57 = vector.broadcast %cst_21 : f32 to vector<8x128xf32>
    %58 = arith.maximumf %56, %57 : vector<8x128xf32>
    %c0_22 = arith.constant 0 : index
    %c0_23 = arith.constant 0 : index
    %59 = vector.load %arg5[%c0_22, %c0_23] : memref<128x128xbf16, #tpu.memory_space<vmem>>, vector<128x128xbf16>
    %60 = arith.truncf %58 : vector<8x128xf32> to vector<8x128xbf16>
    %cst_24 = arith.constant dense<0.000000e+00> : vector<8x128xf32>
    %61 = tpu.matmul %60, %59, %cst_24 {dimension_numbers = #tpu.dot_dimension_numbers<[1], [0], [0], [1], [0, 0, 1, 1], [], []>} : vector<8x128xbf16>, vector<128x128xbf16>, vector<8x128xf32> -> vector<8x128xf32>
    %c0_25 = arith.constant 0 : index
    %c0_26 = arith.constant 0 : index
    %62 = vector.load %arg6[%c0_25, %c0_26] : memref<2x128xf32, #tpu.memory_space<vmem>>, vector<2x128xf32>
    %cst_27 = arith.constant dense<0.000000e+00> : vector<128xf32>
    %63 = vector.multi_reduction <add>, %61, %cst_27 [0] : vector<8x128xf32> to vector<128xf32>
    %64 = vector.shape_cast %63 : vector<128xf32> to vector<1x128xf32>
    %65 = arith.mulf %61, %61 : vector<8x128xf32>
    %cst_28 = arith.constant dense<0.000000e+00> : vector<128xf32>
    %66 = vector.multi_reduction <add>, %65, %cst_28 [0] : vector<8x128xf32> to vector<128xf32>
    %67 = vector.shape_cast %66 : vector<128xf32> to vector<1x128xf32>
    %68 = vector.extract_strided_slice %62 {offsets = [0, 0], sizes = [1, 128], strides = [1, 1]} : vector<2x128xf32> to vector<1x128xf32>
    %69 = vector.extract_strided_slice %62 {offsets = [1, 0], sizes = [1, 128], strides = [1, 1]} : vector<2x128xf32> to vector<1x128xf32>
    %cst_29 = arith.constant 1.250000e-01 : f32
    %70 = vector.broadcast %cst_29 : f32 to vector<1x128xf32>
    %71 = arith.mulf %64, %70 : vector<1x128xf32>
    %cst_30 = arith.constant 1.250000e-01 : f32
    %72 = vector.broadcast %cst_30 : f32 to vector<1x128xf32>
    %73 = arith.mulf %67, %72 : vector<1x128xf32>
    %74 = arith.mulf %71, %71 : vector<1x128xf32>
    %75 = arith.subf %73, %74 : vector<1x128xf32>
    %cst_31 = arith.constant 9.99999974E-6 : f32
    %76 = vector.broadcast %cst_31 : f32 to vector<1x128xf32>
    %77 = arith.addf %75, %76 : vector<1x128xf32>
    %78 = math.rsqrt %77 : vector<1x128xf32>
    %79 = arith.mulf %68, %78 : vector<1x128xf32>
    %80 = arith.mulf %71, %79 : vector<1x128xf32>
    %81 = arith.subf %69, %80 : vector<1x128xf32>
    %82 = vector.broadcast %79 : vector<1x128xf32> to vector<8x128xf32>
    %83 = arith.mulf %61, %82 : vector<8x128xf32>
    %84 = vector.broadcast %81 : vector<1x128xf32> to vector<8x128xf32>
    %85 = arith.addf %83, %84 : vector<8x128xf32>
    %cst_32 = arith.constant 0.000000e+00 : f32
    %86 = vector.broadcast %cst_32 : f32 to vector<8x128xf32>
    %87 = arith.maximumf %85, %86 : vector<8x128xf32>
    %88 = vector.extract_strided_slice %87 {offsets = [0, 0], sizes = [8, 16], strides = [1, 1]} : vector<8x128xf32> to vector<8x16xf32>
    %c0_33 = arith.constant 0 : index
    %c0_34 = arith.constant 0 : index
    %89 = vector.load %arg7[%c0_33, %c0_34] : memref<8x16xf32, #tpu.memory_space<vmem>>, vector<8x16xf32>
    tpu.vector_store %arg7[%c0_33, %c0_34], %88 {strides = array<i32>} : memref<8x16xf32, #tpu.memory_space<vmem>>, vector<8x16xf32>,
    return
  }
}

</mosaic_0001>

<bundles_post_ra>
// kernel: tpu_custom_call.1
= control target key start
LH: loop header
LB: loop body
LE: loop exit
PB: predicated region body
PF: predicated region fallthrough
CT: control target
= control target key end

     0   :  { %12 = vsyncpa [#allocation3], 0  ;;  %s884_s0 = inlined_call_operand.hbm [shape: f32[8,96], index: 0, kind: input, shape index: {}]   ;;  %s885_s1 = inlined_call_operand.hbm [shape: bf16[96,128], index: 1, kind: input, shape index: {}]   ;;  %s886_s2 = inlined_call_operand.vmem [shape: f32[2,128], index: 2, kind: input, shape index: {}]   ;;  %s887_s3 = inlined_call_operand.hbm [shape: bf16[128,128], index: 3, kind: input, shape index: {}]   ;;  %s888_s4 = inlined_call_operand.vmem [shape: f32[2,128], index: 4, kind: input, shape index: {}]   ;;  %s889_s5 = inlined_call_operand.hbm [shape: bf16[128,128], index: 5, kind: input, shape index: {}]   ;;  %s890_s6 = inlined_call_operand.vmem [shape: f32[2,128], index: 6, kind: input, shape index: {}]   ;;  %s891_s7 = inlined_call_operand.hbm [shape: f32[8,16], index: 7, kind: output, shape index: {}]  }
   0x1   :  { %13 = vsyncpa [#allocation6], 0 }
   0x2   :  { %14 = vsyncpa [#allocation9], 0 }
   0x3   :  { %15 = vsyncpa [#allocation4], 0  ;;  %s764_s24 = smov [#allocation5]  }
   0x4   :  { %s31_s25 = sshll.u32 %s764_s24, 4  ;;  %s32_s25 = int_to_ptr.vmem [resolvable:$true] %s31_s25 }
   0x5   :  { %s664_s26 = scalar_lea.vmem %s32_s25, 768  ;;  %p669_p1 = scmp.lt.s32.totalorder %s32_s25, %s32_s25 }
   0x6   :  { %p665_p0 = scmp.ne.s32.totalorder %s32_s25, %s664_s26  ;;  %p670_p2 = scmp.lt.s32.totalorder %s664_s26, %s664_s26 }
   0x8   :  { %p671_p3 = por %p670_p2, %p669_p1 }
   0xa   :  { %p672_p4 = pnand %p671_p3, %p665_p0 }
   0xc   :  { %675 = shalt.err (!%p672_p4)
}
   0xd   :  { %s765_s27 = smov 64   ;;  %s766_s28 = smov 4  }
   0xe   :  { %37 = dma.hbm_to_vmem [thread:$0]  %s885_s1, 768, %s32_s25, [#allocation6], %s765_s27, %s765_s27, %s766_s28  }
   0xf   :  { %s767_s8 = smov [#allocation2]   ;;  %s768_s10 = smov [#allocation7]  }
  0x10   :  { %s22_s9 = sshll.u32 %s767_s8, 4  ;;  %s45_s11 = sshll.u32 %s768_s10, 4  ;;  %s23_s9 = int_to_ptr.vmem [resolvable:$true] %s22_s9  ;;  %s46_s11 = int_to_ptr.vmem [resolvable:$true] %s45_s11 }
  0x11   :  { %s684_s12 = scalar_lea.vmem %s23_s9, 128  ;;  %p689_p6 = scmp.lt.s32.totalorder %s23_s9, %s23_s9 }
  0x12   :  { %p685_p5 = scmp.ne.s32.totalorder %s23_s9, %s684_s12  ;;  %p690_p7 = scmp.lt.s32.totalorder %s684_s12, %s684_s12 }
  0x14   :  { %p691_p8 = por %p690_p7, %p689_p6 }
  0x16   :  { %p692_p9 = pnand %p691_p8, %p685_p5 }
  0x18   :  { %695 = shalt.err (!%p692_p9)
}
  0x19   :  { %25 = dma.hbm_to_vmem [thread:$0]  %s884_s0, 128, %s23_s9, [#allocation3]  }
  0x1a   :  { %s704_s15 = scalar_lea.vmem %s46_s11, 1024  ;;  %p709_p11 = scmp.lt.s32.totalorder %s46_s11, %s46_s11 }
  0x1b   :  { %p705_p10 = scmp.ne.s32.totalorder %s46_s11, %s704_s15  ;;  %p710_p12 = scmp.lt.s32.totalorder %s704_s15, %s704_s15 }
  0x1d   :  { %p711_p13 = por %p710_p12, %p709_p11 }
  0x1f   :  { %p712_p0 = pnand %p711_p13, %p705_p10 }
  0x21   :  { %715 = shalt.err (!%p712_p0)
}
  0x22   :  { %51 = dma.hbm_to_vmem [thread:$0]  %s887_s3, 1024, %s46_s11, [#allocation6], %s765_s27, %s765_s27, %s766_s28  }
  0x23   :  { %s769_s17 = smov [#allocation8]  }
  0x24   :  { %s59_s18 = sshll.u32 %s769_s17, 4  ;;  %s60_s18 = int_to_ptr.vmem [resolvable:$true] %s59_s18 }
  0x25   :  { %s724_s19 = scalar_lea.vmem %s60_s18, 1024  ;;  %p729_p2 = scmp.lt.s32.totalorder %s60_s18, %s60_s18 }
  0x26   :  { %p725_p1 = scmp.ne.s32.totalorder %s60_s18, %s724_s19  ;;  %p730_p3 = scmp.lt.s32.totalorder %s724_s19, %s724_s19 }
  0x28   :  { %p731_p4 = por %p730_p3, %p729_p2 }
  0x2a   :  { %p732_p5 = pnand %p731_p4, %p725_p1 }
  0x2c   :  { %735 = shalt.err (!%p732_p5)
}
  0x2d   :  { %65 = dma.hbm_to_vmem [thread:$0]  %s889_s5, 1024, %s60_s18, [#allocation9], %s765_s27, %s765_s27, %s766_s28  }
  0x2e   :  { %756 = dma.done.wait [#allocation3], 128  }
  0x2f   :  { %757 = vsyncadd [#allocation3], 4294967168 }
  0x30   :  { %758 = dma.done.wait [#allocation6], 1792  }
  0x31   :  { %759 = vsyncadd [#allocation6], 4294965504 }
  0x32   :  { %760 = dma.done.wait [#allocation9], 1024  }
  0x33   :  { %761 = vsyncadd [#allocation9], 4294966272  ;;  %v770_v0 = vmov 0.0   ;;  %vm771_vm0 = vmmov 0   ;;  %v628_v1 = vld [vmem:[#allocation5 + $0x28] sm:$0xff]   ;;  %v629_v2 = vld [vmem:[#allocation5 + $0x20] sm:$0xff]   ;;  %v201_v39 = vlaneseq }
  0x34   :  { %563 = vmatprep.subr.bf16.mxu0 %v770_v0  ;;  %575 = vmatprep.mubr.msk.bf16.mxu0 %vm771_vm0, %v770_v0  ;;  %v630_v3 = vld [vmem:[#allocation5 + $0x18] sm:$0xff]   ;;  %v631_v4 = vld [vmem:[#allocation5 + $0x10] sm:$0xff]   ;;  %v632_v5 = vld [vmem:[#allocation5 + $0x8] sm:$0xff]   ;;  %vm131_vm1 = vcmask 785408   ;;  %s772_s23 = smov [#allocation10]   ;;  %vm496_vm2 = vcmask 130048  }
  0x35   :  { %579 = vmatprep.subr.bf16.mxu1 %v770_v0  ;;  %595 = vmatprep.mubr.msk.bf16.mxu1 %vm771_vm0, %v770_v0  ;;  %v633_v6 = vld [vmem:[#allocation5] sm:$0xff]   ;;  %v81_v7 = vld [vmem:[#allocation2] sm:$0xff]  ;;  %v634_v9 = vld [vmem:[#allocation7 + $0x38] sm:$0xff]   ;;  %v202_v40 = vshrl.u32 %v201_v39, 7  ;;  %s504_s24 = sshll.u32 %s772_s23, 4  ;;  %s505_s24 = int_to_ptr.vmem [resolvable:$true] %s504_s24 }
  0x36   :  { %564 = vmatpush3.bf16.msra.mxu0 %v628_v1  ;;  %v94_v8 = vpack.c.bf16 %v81_v7, %v81_v7  ;;  %580 = vmatpush3.bf16.msra.mxu1 %v634_v9  ;;  %v635_v10 = vld [vmem:[#allocation7 + $0x30] sm:$0xff]   ;;  %v636_v11 = vld [vmem:[#allocation7 + $0x28] sm:$0xff]   ;;  %v637_v12 = vld [vmem:[#allocation7 + $0x20] sm:$0xff]   ;;  %s736_s25 = scalar_lea.vmem %s505_s24, 128  ;;  %p741_p7 = scmp.lt.s32.totalorder %s505_s24, %s505_s24 }
  0x37   :  { %565 = vmatprep.subr.bf16.mxu0 %v770_v0  ;;  %581 = vmatprep.subr.bf16.mxu1 %v770_v0  ;;  %v638_v13 = vld [vmem:[#allocation7 + $0x18] sm:$0xff]   ;;  %v639_v14 = vld [vmem:[#allocation7 + $0x10] sm:$0xff]   ;;  %v640_v15 = vld [vmem:[#allocation7 + $0x8] sm:$0xff]   ;;  %v858_v44 = vsub.s32 0, %v202_v40  ;;  %v861_v48 = vsub.s32 1, %v202_v40  ;;  %p737_p6 = scmp.ne.s32.totalorder %s505_s24, %s736_s25  ;;  %p742_p8 = scmp.lt.s32.totalorder %s736_s25, %s736_s25 }
  0x38   :  { %v641_v16 = vld [vmem:[#allocation7] sm:$0xff]   ;;  %v175_v41 = vld [vmem:[%s886_s2] sm:$0x3]  ;;  %v642_v55 = vld [vmem:[#allocation8 + $0x38] sm:$0xff]  }
  0x39   :  { %v643_v56 = vld [vmem:[#allocation8 + $0x30] sm:$0xff]   ;;  %v644_v57 = vld [vmem:[#allocation8 + $0x28] sm:$0xff]   ;;  %v645_v58 = vld [vmem:[#allocation8 + $0x20] sm:$0xff]   ;;  %p743_p9 = por %p742_p8, %p741_p7 }
  0x3a   :  { %566 = vmatpush3.bf16.msra.mxu0 %v629_v2  ;;  %582 = vmatpush3.bf16.msra.mxu1 %v635_v10  ;;  %v646_v59 = vld [vmem:[#allocation8 + $0x18] sm:$0xff]   ;;  %v647_v60 = vld [vmem:[#allocation8 + $0x10] sm:$0xff]   ;;  %v648_v61 = vld [vmem:[#allocation8 + $0x8] sm:$0xff]  }
  0x3b   :  { %567 = vmatprep.subr.bf16.mxu0 %v770_v0  ;;  %583 = vmatprep.subr.bf16.mxu1 %v770_v0  ;;  %v649_v62 = vld [vmem:[#allocation8] sm:$0xff]   ;;  %p744_p10 = pnand %p743_p9, %p737_p6 }
  0x3e   :  { %568 = vmatpush3.bf16.msra.mxu0 %v630_v3  ;;  %584 = vmatpush3.bf16.msra.mxu1 %v636_v11 }
  0x3f   :  { %569 = vmatprep.subr.bf16.mxu0 %v770_v0  ;;  %585 = vmatprep.subr.bf16.mxu1 %v770_v0 }
  0x42   :  { %570 = vmatpush3.bf16.msra.mxu0 %v631_v4  ;;  %586 = vmatpush3.bf16.msra.mxu1 %v637_v12 }
  0x43   :  { %571 = vmatprep.subr.bf16.mxu0 %v770_v0  ;;  %587 = vmatprep.subr.bf16.mxu1 %v770_v0 }
  0x46   :  { %572 = vmatpush3.bf16.msra.mxu0 %v632_v5  ;;  %588 = vmatpush3.bf16.msra.mxu1 %v638_v13 }
  0x47   :  { %573 = vmatprep.subr.bf16.mxu0 %v770_v0  ;;  %589 = vmatprep.subr.bf16.mxu1 %v770_v0 }
  0x4a   :  { %574 = vmatpush3.bf16.msra.mxu0 %v633_v6  ;;  %590 = vmatpush3.bf16.msra.mxu1 %v639_v14 }
  0x4b   :  { %599 = vmatprep.subr.bf16.mxu0 %v770_v0  ;;  %591 = vmatprep.subr.bf16.mxu1 %v770_v0 }
  0x4d   :  { %576 = vmatmul.mubr.msk.bf16.vlgmr.msra.gmra.mxu0 %vm131_vm1, %v94_v8 }
  0x4e   :  { %615 = vmatprep.mubr.msk.bf16.mxu0 %vm771_vm0, %v770_v0  ;;  %592 = vmatpush3.bf16.msra.mxu1 %v640_v15 }
  0x4f   :  { %593 = vmatprep.subr.bf16.mxu1 %v770_v0  ;;  %600 = vmatpush3.bf16.msra.mxu0 %v642_v55 }
  0x50   :  { %601 = vmatprep.subr.bf16.mxu0 %v770_v0 }
  0x52   :  { %594 = vmatpush3.bf16.msra.mxu1 %v641_v16 }
  0x53   :  { %602 = vmatpush3.bf16.msra.mxu0 %v643_v56 }
  0x54   :  { %603 = vmatprep.subr.bf16.mxu0 %v770_v0 }
  0x57   :  { %604 = vmatpush3.bf16.msra.mxu0 %v644_v57  ;;  %v459_v57 = vld [vmem:[%s890_s6] sm:$0x3] }
  0x58   :  { %605 = vmatprep.subr.bf16.mxu0 %v770_v0 }
  0x5b   :  { %606 = vmatpush3.bf16.msra.mxu0 %v645_v58 }
  0x5c   :  { %607 = vmatprep.subr.bf16.mxu0 %v770_v0 }
  0x5f   :  { %608 = vmatpush3.bf16.msra.mxu0 %v646_v59 }
  0x60   :  { %609 = vmatprep.subr.bf16.mxu0 %v770_v0 }
  0x63   :  { %610 = vmatpush3.bf16.msra.mxu0 %v647_v60 }
  0x64   :  { %611 = vmatprep.subr.bf16.mxu0 %v770_v0 }
  0x67   :  { %612 = vmatpush3.bf16.msra.mxu0 %v648_v61 }
  0x68   :  { %613 = vmatprep.subr.bf16.mxu0 %v770_v0 }
  0x6b   :  { %614 = vmatpush3.bf16.msra.mxu0 %v649_v62 }
 0x10d   :  { %v169_v17 = vpop.f32.mrf.mxu0 }
 0x10e   :  { %v176_v18 = vrot.slane %v169_v17, 4  ;;  %v182_v19 = vmul.f32 %v169_v17, %v169_v17 }
 0x10f   :  { %v577_v20 = vpop.f32.mrf.mxu0 }
 0x110   :  { %v177_v21 = vadd.f32 %v176_v18, %v169_v17  ;;  %v183_v22 = vrot.slane %v182_v19, 4 }
 0x111   :  { %v172_v23 = vpop.f32.mrf.mxu0 }
 0x112   :  { %v178_v24 = vrot.slane %v177_v21, 2  ;;  %v184_v25 = vadd.f32 %v183_v22, %v182_v19 }
 0x113   :  { %v578_v26 = vpop.f32.mrf.mxu0 }
 0x114   :  { %v179_v27 = vadd.f32 %v178_v24, %v177_v21  ;;  %v185_v28 = vrot.slane %v184_v25, 2  ;;  %v317_v21 = vld [vmem:[%s888_s4] sm:$0x3] }
 0x116   :  { %v180_v29 = vrot.slane %v179_v27, 1  ;;  %v186_v30 = vadd.f32 %v185_v28, %v184_v25 }
 0x118   :  { %v181_v31 = vadd.f32 %v180_v29, %v179_v27  ;;  %v187_v32 = vrot.slane %v186_v30, 1 }
 0x11a   :  { %v188_v33 = vadd.f32 %v187_v32, %v186_v30  ;;  %v189_v34 = vmul.f32 0.125, %v181_v31 }
 0x11c   :  { %v190_v35 = vmul.f32 0.125, %v188_v33  ;;  %v191_v36 = vmul.f32 %v189_v34, %v189_v34 }
 0x11e   :  { %v192_v37 = vsub.f32 %v190_v35, %v191_v36 }
 0x120   :  { %v193_v38 = vadd.f32 1e-05, %v192_v37 }
 0x122   :  { %650 = vrsqrt.f32 %v193_v38 }
 0x12f   :  { %v651_v42 = vpop.eup %650 }
 0x130   :  { %v195_v43 = vmul.f32 %v651_v42, %v175_v41 }
 0x132   :  { %v196_v45 = vmul.f32 %v195_v43, %v189_v34  ;;  %v204_v46 = vrot.slane %v195_v43, %v858_v44 }
 0x134   :  { %v198_v47 = vrot.slane %v196_v45, 7  ;;  %v205_v50 = vmul.f32 %v204_v46, %v169_v17 }
 0x136   :  { %v200_v49 = vsub.f32 %v175_v41, %v198_v47 }
 0x138   :  { %v209_v51 = vrot.slane %v200_v49, %v861_v48 }
 0x13a   :  { %v210_v52 = vadd.f32 %v209_v51, %v205_v50 }
 0x13c   :  { %v211_v53 = vmax.f32 %v210_v52, 0.0 }
 0x13e   :  { %v228_v54 = vpack.c.bf16 %v211_v53, %v211_v53 }
 0x140   :  { %596 = vmatmul.mubr.bf16.vlgmr.msra.gmra.mxu1 %v228_v54 }
 0x200   :  { %v311_v63 = vpop.f32.mrf.mxu1 }
 0x201   :  { %v318_v1 = vrot.slane %v311_v63, 4  ;;  %v324_v2 = vmul.f32 %v311_v63, %v311_v63 }
 0x202   :  { %v597_v3 = vpop.f32.mrf.mxu1 }
 0x203   :  { %v319_v4 = vadd.f32 %v318_v1, %v311_v63  ;;  %v325_v5 = vrot.slane %v324_v2, 4 }
 0x204   :  { %v314_v6 = vpop.f32.mrf.mxu1 }
 0x205   :  { %v320_v7 = vrot.slane %v319_v4, 2  ;;  %v326_v8 = vadd.f32 %v325_v5, %v324_v2 }
 0x206   :  { %v598_v9 = vpop.f32.mrf.mxu1 }
 0x207   :  { %v321_v10 = vadd.f32 %v320_v7, %v319_v4  ;;  %v327_v11 = vrot.slane %v326_v8, 2 }
 0x209   :  { %v322_v12 = vrot.slane %v321_v10, 1  ;;  %v328_v13 = vadd.f32 %v327_v11, %v326_v8 }
 0x20b   :  { %v323_v14 = vadd.f32 %v322_v12, %v321_v10  ;;  %v329_v15 = vrot.slane %v328_v13, 1 }
 0x20d   :  { %v330_v16 = vadd.f32 %v329_v15, %v328_v13  ;;  %v331_v0 = vmul.f32 0.125, %v323_v14 }
 0x20f   :  { %v332_v17 = vmul.f32 0.125, %v330_v16  ;;  %v333_v18 = vmul.f32 %v331_v0, %v331_v0 }
 0x211   :  { %v334_v19 = vsub.f32 %v332_v17, %v333_v18 }
 0x213   :  { %v335_v20 = vadd.f32 1e-05, %v334_v19 }
 0x215   :  { %652 = vrsqrt.f32 %v335_v20 }
 0x222   :  { %v653_v22 = vpop.eup %652 }
 0x223   :  { %v337_v23 = vmul.f32 %v653_v22, %v317_v21 }
 0x225   :  { %v338_v24 = vmul.f32 %v337_v23, %v331_v0  ;;  %v346_v26 = vrot.slane %v337_v23, %v858_v44 }
 0x227   :  { %v340_v25 = vrot.slane %v338_v24, 7  ;;  %v347_v28 = vmul.f32 %v346_v26, %v311_v63 }
 0x229   :  { %v342_v27 = vsub.f32 %v317_v21, %v340_v25 }
 0x22b   :  { %v351_v29 = vrot.slane %v342_v27, %v861_v48 }
 0x22d   :  { %v352_v30 = vadd.f32 %v351_v29, %v347_v28 }
 0x22f   :  { %v353_v31 = vmax.f32 %v352_v30, 0.0 }
 0x231   :  { %v370_v32 = vpack.c.bf16 %v353_v31, %v353_v31 }
 0x233   :  { %616 = vmatmul.mubr.bf16.vlgmr.msra.gmra.mxu0 %v370_v32 }
 0x2f3   :  { %v453_v33 = vpop.f32.mrf.mxu0 }
 0x2f4   :  { %v460_v34 = vrot.slane %v453_v33, 4  ;;  %v466_v35 = vmul.f32 %v453_v33, %v453_v33 }
 0x2f5   :  { %v617_v36 = vpop.f32.mrf.mxu0 }
 0x2f6   :  { %v461_v37 = vadd.f32 %v460_v34, %v453_v33  ;;  %v467_v38 = vrot.slane %v466_v35, 4 }
 0x2f7   :  { %v456_v39 = vpop.f32.mrf.mxu0 }
 0x2f8   :  { %v462_v40 = vrot.slane %v461_v37, 2  ;;  %v468_v41 = vadd.f32 %v467_v38, %v466_v35 }
 0x2f9   :  { %v618_v42 = vpop.f32.mrf.mxu0 }
 0x2fa   :  { %v463_v43 = vadd.f32 %v462_v40, %v461_v37  ;;  %v469_v45 = vrot.slane %v468_v41, 2 }
 0x2fc   :  { %v464_v46 = vrot.slane %v463_v43, 1  ;;  %v470_v47 = vadd.f32 %v469_v45, %v468_v41 }
 0x2fe   :  { %v465_v49 = vadd.f32 %v464_v46, %v463_v43  ;;  %v471_v50 = vrot.slane %v470_v47, 1 }
 0x300   :  { %v472_v51 = vadd.f32 %v471_v50, %v470_v47  ;;  %v473_v52 = vmul.f32 0.125, %v465_v49 }
 0x302   :  { %v474_v53 = vmul.f32 0.125, %v472_v51  ;;  %v475_v54 = vmul.f32 %v473_v52, %v473_v52 }
 0x304   :  { %v476_v55 = vsub.f32 %v474_v53, %v475_v54 }
 0x306   :  { %v477_v56 = vadd.f32 1e-05, %v476_v55 }
 0x308   :  { %654 = vrsqrt.f32 %v477_v56 }
 0x315   :  { %v655_v58 = vpop.eup %654 }
 0x316   :  { %v479_v59 = vmul.f32 %v655_v58, %v459_v57 }
 0x318   :  { %v480_v60 = vmul.f32 %v479_v59, %v473_v52  ;;  %v488_v62 = vrot.slane %v479_v59, %v858_v44 }
 0x31a   :  { %v482_v61 = vrot.slane %v480_v60, 7  ;;  %v489_v1 = vmul.f32 %v488_v62, %v453_v33 }
 0x31c   :  { %v484_v63 = vsub.f32 %v459_v57, %v482_v61 }
 0x31e   :  { %v493_v2 = vrot.slane %v484_v63, %v861_v48 }
 0x320   :  { %v494_v3 = vadd.f32 %v493_v2, %v489_v1 }
 0x322   :  { %v495_v4 = vmax.f32 %v494_v3, 0.0 }
 0x324   :  { %497 = vst.msk [vmem:[#allocation10] sm:$0xff] %vm496_vm2, %v495_v4 }
 0x325   :  { %747 = shalt.err (!%p744_p10)
}
 0x326   :  { %507 = dma.vmem_to_hbm [thread:$0]  %s505_s24, 128, %s891_s7, [#allocation4]  }
 0x327   :  { %762 = dma.done.wait [#allocation4], 128  }
 0x328   :  { %763 = vsyncadd [#allocation4], 4294967168 }
 0x329   :  { %511 = vsyncpa [#allocation3], 1 }
 0x32a   :  { %512 = vsyncpa [#allocation6], 1 }
 0x32b   :  { %513 = vsyncpa [#allocation9], 1 }
 0x32c   :  { %514 = vsyncpa [#allocation4], 1 }

</bundles_post_ra>
